<compile_context>
chip_gen: v5e
topology: v5e:2x2
jax: 0.10.0
libtpu: 0.0.40
codegen_flags: <defaults>
</compile_context>

<pallas_src>
import functools

import jax
import jax.numpy as jnp
from jax import lax
from jax.experimental import pallas as pl
from jax.experimental.pallas import tpu as pltpu


def _round_up(x, m):
    return ((x + m - 1) // m) * m


def _tensorcores_per_chip():
    """Best-effort TensorCore count per chip (2 on v7x / megacore, else 1)."""
    try:
        dev = jax.devices()[0]
        n = getattr(dev, "num_cores", None)
        if n:
            return max(1, min(int(n), 2))
        if "v7" in str(getattr(dev, "device_kind", "")).lower():
            return 2
    except Exception:
        pass
    return 1


def _choose_tiles(B, C, itemsize, target_bytes, block_rows=None, block_cols=None):
    """Pick (tile_b, tile_c) so a logits block is ~target_bytes (default 2 MiB)."""
    # ---- columns ----
    if block_cols is not None and block_cols < C:
        tile_c = min(_round_up(int(block_cols), 128), C)
        if tile_c < C and tile_c % 128 != 0:        # cannot satisfy (x,128) tiling
            tile_c = C
    elif C * itemsize * 128 <= target_bytes:
        tile_c = C                                   # >=128 full rows fit the budget
    else:
        tile_c = max(128, ((target_bytes // (256 * itemsize)) // 128) * 128)
        tile_c = int(min(tile_c, C))
        if tile_c < C and tile_c % 128 != 0:
            tile_c = C
    # ---- rows ----
    if block_rows is not None:
        rows = max(int(block_rows), 1)
    else:
        rows = max(int(target_bytes // max(1, tile_c * itemsize)), 16)
    if rows >= B:
        tile_b = B                                   # full-dim block: any B is legal
    else:
        tile_b = max((rows // 16) * 16, 16)          # multiple of 16 (bf16 sublanes)
    return int(tile_b), int(tile_c)


def _make_kernel(*, eps, B, C, tile_b, tile_c, tiles_per_core, mask_rows, mask_cols):
    """Cross-entropy with label smoothing; constants baked in at trace time."""
    w_target = float(1.0 - eps)          # weight on the target logit
    w_uniform = float(eps) / float(C)    # uniform weight on every logit

    def kernel(logits_ref, labels_ref, out_ref, m_ref, l_ref, w_ref):
        core = pl.program_id(0)
        j = pl.program_id(1)             # row tile within this core's share
        k = pl.program_id(2)             # class (vocab) tile
        num_k = pl.num_programs(2)

        @pl.when(jnp.logical_and(j == 0, k == 0))
        def _init_core_partial():
            out_ref[...] = jnp.zeros(out_ref.shape, jnp.float32)

        @pl.when(k == 0)
        def _init_row_state():
            m_ref[...] = jnp.full(m_ref.shape, -jnp.inf, jnp.float32)
            l_ref[...] = jnp.zeros(l_ref.shape, jnp.float32)
            w_ref[...] = jnp.zeros(w_ref.shape, jnp.float32)

        # Load in native dtype (bf16/f32), upcast on the VPU (hides under DMA).
        x = logits_ref[...].astype(jnp.float32)          # (tile_b, tile_c)
        labels = labels_ref[...]                          # (tile_b, 1) int32
        tb, tc = x.shape

        col_ids = k * tile_c + lax.broadcasted_iota(jnp.int32, (tb, tc), 1)
        if mask_cols:                                     # ragged last class tile
            col_ok = col_ids < C
            x_max_src = jnp.where(col_ok, x, -jnp.inf)
            x_sum_src = jnp.where(col_ok, x, 0.0)
        else:
            x_max_src = x
            x_sum_src = x

        # ---- online (streaming) logsumexp across the class grid axis ----
        blk_max = jnp.max(x_max_src, axis=-1, keepdims=True)          # (tb,1)
        m_new = jnp.maximum(m_ref[...], blk_max)
        l_ref[...] = (l_ref[...] * jnp.exp(m_ref[...] - m_new)
                      + jnp.sum(jnp.exp(x_max_src - m_new), axis=-1, keepdims=True))
        m_ref[...] = m_new

        # ---- weighted logit sum: (eps/C)*sum(x) + (1-eps)*x[target] ----
        # (linear in x -> no online rescale; two row reduces, no weights tile)
        tgt = jnp.sum(jnp.where(col_ids == labels, x, 0.0), axis=-1, keepdims=True)
        if w_uniform != 0.0:
            w_ref[...] += (w_uniform * jnp.sum(x_sum_src, axis=-1, keepdims=True)
                           + w_target * tgt)
        else:
            w_ref[...] += w_target * tgt

        @pl.when(k == num_k - 1)
        def _row_finalize():
            per_example = m_ref[...] + jnp.log(l_ref[...]) - w_ref[...]   # (tb,1)
            if mask_rows:                      # ragged / duplicated row tiles
                row_ids = ((core * tiles_per_core + j) * tile_b
                           + lax.broadcasted_iota(jnp.int32, (tb, 1), 0))
                per_example = jnp.where(row_ids < B, per_example, 0.0)
            out_ref[...] += jnp.sum(per_example, axis=0, keepdims=True).reshape(1, 1, 1)

    return kernel


def cross_entropy_label_smoothing(predict, targets, label_smoothing=0.0,
                                  block_rows=None, block_cols=None,
                                  target_block_bytes=2 << 20):
    """predict: (B, C) logits (any float dtype); targets: (B,) int class ids.
    Mean-reduced CE with label smoothing (== torch.nn.CrossEntropyLoss)."""
    B, C = predict.shape
    itemsize = jnp.dtype(predict.dtype).itemsize
    labels2d = targets.astype(jnp.int32).reshape(B, 1)

    tile_b, tile_c = _choose_tiles(B, C, itemsize, target_block_bytes,
                                   block_rows=block_rows, block_cols=block_cols)
    num_row_tiles = pl.cdiv(B, tile_b)
    num_col_tiles = pl.cdiv(C, tile_c)

    num_cores = _tensorcores_per_chip() if num_row_tiles >= 2 else 1
    tiles_per_core = pl.cdiv(num_row_tiles, num_cores)

    mask_rows = (num_cores * tiles_per_core * tile_b) != B
    mask_cols = (num_col_tiles * tile_c) != C

    kernel = _make_kernel(eps=float(label_smoothing), B=B, C=C,
                          tile_b=tile_b, tile_c=tile_c,
                          tiles_per_core=tiles_per_core,
                          mask_rows=mask_rows, mask_cols=mask_cols)

    last_row_tile = num_row_tiles - 1

    def _row_tile(c, j):
        # Clamp: tail iterations created by the per-core split re-read the last
        # valid tile; their rows are masked out in-kernel, so no double count.
        return jnp.minimum(c * tiles_per_core + j, last_row_tile)

    logits_spec = pl.BlockSpec((tile_b, tile_c), lambda c, j, k: (_row_tile(c, j), k))
    labels_spec = pl.BlockSpec((tile_b, 1), lambda c, j, k: (_row_tile(c, j), 0))
    out_spec = pl.BlockSpec((1, 1, 1), lambda c, j, k: (c, 0, 0))  # per-core partial

    blk_bytes = tile_b * tile_c * itemsize
    # 2x double-buffered native-dtype blocks + f32 upcast/temporaries + slack,
    # capped under v7x's 64 MiB physical VMEM.
    vmem_limit = int(min(max(3 * blk_bytes + 6 * tile_b * tile_c * 4 + (2 << 20),
                             16 << 20), 48 << 20))

    cost = pl.CostEstimate(
        flops=int(6 * B * C),
        transcendentals=int(B * C + B * num_col_tiles + B),
        bytes_accessed=int(B * C * itemsize + B * 4 + num_cores * 4),
    )

    partials = pl.pallas_call(
        kernel,
        out_shape=jax.ShapeDtypeStruct((num_cores, 1, 1), jnp.float32),
        grid_spec=pltpu.PrefetchScalarGridSpec(
            num_scalar_prefetch=0,
            grid=(num_cores, tiles_per_core, num_col_tiles),
            in_specs=[logits_spec, labels_spec],
            out_specs=out_spec,
            scratch_shapes=[
                pltpu.VMEM((tile_b, 1), jnp.float32),   # running row max
                pltpu.VMEM((tile_b, 1), jnp.float32),   # running sum(exp)
                pltpu.VMEM((tile_b, 1), jnp.float32),   # running weighted logit sum
            ],
        ),
        compiler_params=pltpu.CompilerParams(
            dimension_semantics=("parallel", "arbitrary", "arbitrary"),
            vmem_limit_bytes=vmem_limit,
        ),
        cost_estimate=cost,
    )(predict, labels2d)

    return jnp.sum(partials) / B


class CriterionPallas:
    """JAX/Pallas mirror of vemol's Criterion base module (train-mode forward)."""

    def __init__(self, label_smoothing=0.0, module_loss=False,
                 block_rows=None, block_cols=None):
        self.label_smoothing = float(label_smoothing)
        self.module_loss_enabled = module_loss
        self.criterion = functools.partial(
            cross_entropy_label_smoothing,
            label_smoothing=self.label_smoothing,
            block_rows=block_rows, block_cols=block_cols)

    def forward(self, predict, labels):
        # labels is a tuple/list; the target tensor is labels[1]
        result = {}
        result['loss'] = self.criterion(predict, labels[1])
        result['predict'] = predict
        result['label'] = labels[1]
        result['sample_size'] = 1
        result['log'] = {}
        # TODO(synk): cfg.module_loss path sums submodule .loss() terms; the
        # base Criterion registers no submodules, so it is a no-op here.
        return result


if __name__ == "__main__":
    key = jax.random.PRNGKey(0)
    k1, k2, k3, k4 = jax.random.split(key, 4)

    def reference(pred, tgt, eps):
        logp = jax.nn.log_softmax(pred.astype(jnp.float32), axis=-1)
        nll = -jnp.take_along_axis(logp, tgt[:, None], axis=-1)[:, 0]
        smooth = -jnp.mean(logp, axis=-1)
        return jnp.mean((1.0 - eps) * nll + eps * smooth)

    # --- Test 1: bf16 logits, ragged (non-multiple-of-8) batch, one full block ---
    B1, C1, eps1 = 37, 128, 0.1
    pred1 = jax.random.normal(k1, (B1, C1), dtype=jnp.float32).astype(jnp.bfloat16)
    tgt1 = jax.random.randint(k2, (B1,), 0, C1, dtype=jnp.int32)
    crit = CriterionPallas(label_smoothing=eps1)
    res = crit.forward(pred1, (jnp.arange(B1, dtype=jnp.int32), tgt1))
    loss1 = jax.block_until_ready(res['loss'])
    ref1 = reference(pred1, tgt1, eps1)
    assert jnp.allclose(loss1, ref1, rtol=5e-4, atol=5e-4), (loss1, ref1)

    # --- Test 2: f32 logits with forced row/col tiling -> exercises the online
    #     logsumexp, ragged class tile (column mask) and ragged row tiles ---
    B2, C2, eps2 = 70, 320, 0.1
    pred2 = jax.random.normal(k3, (B2, C2), dtype=jnp.float32)
    tgt2 = jax.random.randint(k4, (B2,), 0, C2, dtype=jnp.int32)
    loss2 = cross_entropy_label_smoothing(pred2, tgt2, label_smoothing=eps2,
                                          block_rows=32, block_cols=128)
    loss2 = jax.block_until_ready(loss2)
    ref2 = reference(pred2, tgt2, eps2)
    assert jnp.allclose(loss2, ref2, rtol=1e-4, atol=1e-4), (loss2, ref2)

    print("KERNEL_OK")
</pallas_src>

<mosaic_0001>
module attributes {stable_mosaic.version = 11 : i64} {
  func.func @kernel(%arg0: i32, %arg1: i32, %arg2: i32, %arg3: memref<37x128xbf16, #tpu.memory_space<vmem>>, %arg4: memref<37x1xi32, #tpu.memory_space<vmem>>, %arg5: memref<1x1x1xf32, #tpu.memory_space<vmem>>, %arg6: memref<37x1xf32, #tpu.memory_space<vmem>>, %arg7: memref<37x1xf32, #tpu.memory_space<vmem>>, %arg8: memref<37x1xf32, #tpu.memory_space<vmem>>) attributes {dimension_semantics = [#tpu.dimension_semantics<parallel>, #tpu.dimension_semantics<arbitrary>, #tpu.dimension_semantics<arbitrary>], iteration_bounds = array<i64: 1, 1, 1>, scalar_prefetch = 0 : i64, scratch_operands = 3 : i64, tpu.core_type = #tpu.core_type<tc>, window_params = [{transform_indices = @transform_0, window_bounds = array<i64: 37, 128>}, {transform_indices = @transform_1, window_bounds = array<i64: 37, 1>}, {transform_indices = @transform_2, window_bounds = array<i64: 1, 1, 1>}]} {
    %c0_i32 = arith.constant 0 : i32
    %0 = arith.cmpi eq, %arg1, %c0_i32 : i32
    %c0_i32_0 = arith.constant 0 : i32
    %1 = arith.cmpi eq, %arg2, %c0_i32_0 : i32
    %2 = arith.andi %0, %1 : i1
    %3 = arith.extui %2 : i1 to i32
    %c0_i32_1 = arith.constant 0 : i32
    %4 = arith.cmpi ne, %3, %c0_i32_1 : i32
    scf.if %4 {
      %cst_29 = arith.constant 0.000000e+00 : f32
      %51 = vector.broadcast %cst_29 : f32 to vector<1x1x1xf32>
      %c0_30 = arith.constant 0 : index
      %c0_31 = arith.constant 0 : index
      %c0_32 = arith.constant 0 : index
      %52 = vector.load %arg5[%c0_30, %c0_31, %c0_32] : memref<1x1x1xf32, #tpu.memory_space<vmem>>, vector<1x1x1xf32>
      tpu.vector_store %arg5[%c0_30, %c0_31, %c0_32], %51 {strides = array<i32>} : memref<1x1x1xf32, #tpu.memory_space<vmem>>, vector<1x1x1xf32>,
    } else {
    }
    %c0_i32_2 = arith.constant 0 : i32
    %5 = arith.cmpi eq, %arg2, %c0_i32_2 : i32
    %6 = arith.extui %5 : i1 to i32
    %c0_i32_3 = arith.constant 0 : i32
    %7 = arith.cmpi ne, %6, %c0_i32_3 : i32
    scf.if %7 {
      %cst_29 = arith.constant 0xFF800000 : f32
      %51 = vector.broadcast %cst_29 : f32 to vector<37x1xf32>
      %c0_30 = arith.constant 0 : index
      %c0_31 = arith.constant 0 : index
      %52 = vector.load %arg6[%c0_30, %c0_31] : memref<37x1xf32, #tpu.memory_space<vmem>>, vector<37x1xf32>
      tpu.vector_store %arg6[%c0_30, %c0_31], %51 {strides = array<i32>} : memref<37x1xf32, #tpu.memory_space<vmem>>, vector<37x1xf32>,
      %cst_32 = arith.constant 0.000000e+00 : f32
      %53 = vector.broadcast %cst_32 : f32 to vector<37x1xf32>
      %c0_33 = arith.constant 0 : index
      %c0_34 = arith.constant 0 : index
      %54 = vector.load %arg7[%c0_33, %c0_34] : memref<37x1xf32, #tpu.memory_space<vmem>>, vector<37x1xf32>
      tpu.vector_store %arg7[%c0_33, %c0_34], %53 {strides = array<i32>} : memref<37x1xf32, #tpu.memory_space<vmem>>, vector<37x1xf32>,
      %cst_35 = arith.constant 0.000000e+00 : f32
      %55 = vector.broadcast %cst_35 : f32 to vector<37x1xf32>
      %c0_36 = arith.constant 0 : index
      %c0_37 = arith.constant 0 : index
      %56 = vector.load %arg8[%c0_36, %c0_37] : memref<37x1xf32, #tpu.memory_space<vmem>>, vector<37x1xf32>
      tpu.vector_store %arg8[%c0_36, %c0_37], %55 {strides = array<i32>} : memref<37x1xf32, #tpu.memory_space<vmem>>, vector<37x1xf32>,
    } else {
    }
    %c0 = arith.constant 0 : index
    %c0_4 = arith.constant 0 : index
    %8 = vector.load %arg3[%c0, %c0_4] : memref<37x128xbf16, #tpu.memory_space<vmem>>, vector<37x128xbf16>
    %9 = arith.extf %8 : vector<37x128xbf16> to vector<37x128xf32>
    %c0_5 = arith.constant 0 : index
    %c0_6 = arith.constant 0 : index
    %10 = vector.load %arg4[%c0_5, %c0_6] : memref<37x1xi32, #tpu.memory_space<vmem>>, vector<37x1xi32>
    %c128_i32 = arith.constant 128 : i32
    %11 = arith.muli %arg2, %c128_i32 : i32
    %12 = tpu.iota {dimensions = array<i32: 1>} : vector<37x128xi32>
    %13 = vector.broadcast %11 : i32 to vector<37x128xi32>
    %14 = arith.addi %13, %12 : vector<37x128xi32>
    %cst = arith.constant dense<0xFF800000> : vector<37xf32>
    %15 = vector.multi_reduction <maximumf>, %9, %cst [1] : vector<37x128xf32> to vector<37xf32>
    %16 = vector.shape_cast %15 : vector<37xf32> to vector<37x1xf32>
    %c0_7 = arith.constant 0 : index
    %c0_8 = arith.constant 0 : index
    %17 = vector.load %arg6[%c0_7, %c0_8] : memref<37x1xf32, #tpu.memory_space<vmem>>, vector<37x1xf32>
    %18 = arith.maximumf %17, %16 : vector<37x1xf32>
    %c0_9 = arith.constant 0 : index
    %c0_10 = arith.constant 0 : index
    %19 = vector.load %arg7[%c0_9, %c0_10] : memref<37x1xf32, #tpu.memory_space<vmem>>, vector<37x1xf32>
    %c0_11 = arith.constant 0 : index
    %c0_12 = arith.constant 0 : index
    %20 = vector.load %arg6[%c0_11, %c0_12] : memref<37x1xf32, #tpu.memory_space<vmem>>, vector<37x1xf32>
    %21 = arith.subf %20, %18 : vector<37x1xf32>
    %22 = math.exp %21 : vector<37x1xf32>
    %23 = arith.mulf %19, %22 : vector<37x1xf32>
    %24 = vector.broadcast %18 : vector<37x1xf32> to vector<37x128xf32>
    %25 = arith.subf %9, %24 : vector<37x128xf32>
    %26 = math.exp %25 : vector<37x128xf32>
    %cst_13 = arith.constant dense<0.000000e+00> : vector<37xf32>
    %27 = vector.multi_reduction <add>, %26, %cst_13 [1] : vector<37x128xf32> to vector<37xf32>
    %28 = vector.shape_cast %27 : vector<37xf32> to vector<37x1xf32>
    %29 = arith.addf %23, %28 : vector<37x1xf32>
    %c0_14 = arith.constant 0 : index
    %c0_15 = arith.constant 0 : index
    %30 = vector.load %arg7[%c0_14, %c0_15] : memref<37x1xf32, #tpu.memory_space<vmem>>, vector<37x1xf32>
    tpu.vector_store %arg7[%c0_14, %c0_15], %29 {strides = array<i32>} : memref<37x1xf32, #tpu.memory_space<vmem>>, vector<37x1xf32>,
    %c0_16 = arith.constant 0 : index
    %c0_17 = arith.constant 0 : index
    %31 = vector.load %arg6[%c0_16, %c0_17] : memref<37x1xf32, #tpu.memory_space<vmem>>, vector<37x1xf32>
    tpu.vector_store %arg6[%c0_16, %c0_17], %18 {strides = array<i32>} : memref<37x1xf32, #tpu.memory_space<vmem>>, vector<37x1xf32>,
    %32 = vector.broadcast %10 : vector<37x1xi32> to vector<37x128xi32>
    %33 = arith.cmpi eq, %14, %32 : vector<37x128xi32>
    %cst_18 = arith.constant 0.000000e+00 : f32
    %34 = vector.broadcast %cst_18 : f32 to vector<37x128xf32>
    %35 = arith.select %33, %9, %34 : vector<37x128xi1>, vector<37x128xf32>
    %cst_19 = arith.constant dense<0.000000e+00> : vector<37xf32>
    %36 = vector.multi_reduction <add>, %35, %cst_19 [1] : vector<37x128xf32> to vector<37xf32>
    %37 = vector.shape_cast %36 : vector<37xf32> to vector<37x1xf32>
    %c0_20 = arith.constant 0 : index
    %c0_21 = arith.constant 0 : index
    %38 = vector.load %arg8[%c0_20, %c0_21] : memref<37x1xf32, #tpu.memory_space<vmem>>, vector<37x1xf32>
    %cst_22 = arith.constant dense<0.000000e+00> : vector<37xf32>
    %39 = vector.multi_reduction <add>, %9, %cst_22 [1] : vector<37x128xf32> to vector<37xf32>
    %40 = vector.shape_cast %39 : vector<37xf32> to vector<37x1xf32>
    %cst_23 = arith.constant 7.812500e-04 : f32
    %41 = vector.broadcast %cst_23 : f32 to vector<37x1xf32>
    %42 = arith.mulf %41, %40 : vector<37x1xf32>
    %cst_24 = arith.constant 0.899999976 : f32
    %43 = vector.broadcast %cst_24 : f32 to vector<37x1xf32>
    %44 = arith.mulf %43, %37 : vector<37x1xf32>
    %45 = arith.addf %42, %44 : vector<37x1xf32>
    %46 = arith.addf %38, %45 : vector<37x1xf32>
    %c0_25 = arith.constant 0 : index
    %c0_26 = arith.constant 0 : index
    %47 = vector.load %arg8[%c0_25, %c0_26] : memref<37x1xf32, #tpu.memory_space<vmem>>, vector<37x1xf32>
    tpu.vector_store %arg8[%c0_25, %c0_26], %46 {strides = array<i32>} : memref<37x1xf32, #tpu.memory_space<vmem>>, vector<37x1xf32>,
    %c0_i32_27 = arith.constant 0 : i32
    %48 = arith.cmpi eq, %arg2, %c0_i32_27 : i32
    %49 = arith.extui %48 : i1 to i32
    %c0_i32_28 = arith.constant 0 : i32
    %50 = arith.cmpi ne, %49, %c0_i32_28 : i32
    scf.if %50 {
      %c0_29 = arith.constant 0 : index
      %c0_30 = arith.constant 0 : index
      %51 = vector.load %arg6[%c0_29, %c0_30] : memref<37x1xf32, #tpu.memory_space<vmem>>, vector<37x1xf32>
      %c0_31 = arith.constant 0 : index
      %c0_32 = arith.constant 0 : index
      %52 = vector.load %arg7[%c0_31, %c0_32] : memref<37x1xf32, #tpu.memory_space<vmem>>, vector<37x1xf32>
      %53 = math.log %52 : vector<37x1xf32>
      %54 = arith.addf %51, %53 : vector<37x1xf32>
      %c0_33 = arith.constant 0 : index
      %c0_34 = arith.constant 0 : index
      %55 = vector.load %arg8[%c0_33, %c0_34] : memref<37x1xf32, #tpu.memory_space<vmem>>, vector<37x1xf32>
      %56 = arith.subf %54, %55 : vector<37x1xf32>
      %c0_35 = arith.constant 0 : index
      %c0_36 = arith.constant 0 : index
      %c0_37 = arith.constant 0 : index
      %57 = vector.load %arg5[%c0_35, %c0_36, %c0_37] : memref<1x1x1xf32, #tpu.memory_space<vmem>>, vector<1x1x1xf32>
      %cst_38 = arith.constant dense<0.000000e+00> : vector<1xf32>
      %58 = vector.multi_reduction <add>, %56, %cst_38 [0] : vector<37x1xf32> to vector<1xf32>
      %59 = vector.shape_cast %58 : vector<1xf32> to vector<1x1xf32>
      %60 = vector.shape_cast %59 : vector<1x1xf32> to vector<1x1x1xf32>
      %61 = arith.addf %57, %60 : vector<1x1x1xf32>
      %c0_39 = arith.constant 0 : index
      %c0_40 = arith.constant 0 : index
      %c0_41 = arith.constant 0 : index
      %62 = vector.load %arg5[%c0_39, %c0_40, %c0_41] : memref<1x1x1xf32, #tpu.memory_space<vmem>>, vector<1x1x1xf32>
      tpu.vector_store %arg5[%c0_39, %c0_40, %c0_41], %61 {strides = array<i32>} : memref<1x1x1xf32, #tpu.memory_space<vmem>>, vector<1x1x1xf32>,
    } else {
    }
    return
  }
  func.func @transform_0(%arg0: i32, %arg1: i32, %arg2: i32) -> (i32, i32) {
    %c1_i32 = arith.constant 1 : i32
    %0 = arith.muli %arg0, %c1_i32 : i32
    %1 = arith.addi %0, %arg1 : i32
    %c0_i32 = arith.constant 0 : i32
    %2 = arith.minsi %1, %c0_i32 : i32
    %c0_i32_0 = arith.constant 0 : i32
    return %2, %arg2 : i32, i32
  }
  func.func @transform_1(%arg0: i32, %arg1: i32, %arg2: i32) -> (i32, i32) {
    %c1_i32 = arith.constant 1 : i32
    %0 = arith.muli %arg0, %c1_i32 : i32
    %1 = arith.addi %0, %arg1 : i32
    %c0_i32 = arith.constant 0 : i32
    %2 = arith.minsi %1, %c0_i32 : i32
    %c0_i32_0 = arith.constant 0 : i32
    %c0_i32_1 = arith.constant 0 : i32
    return %2, %c0_i32_0 : i32, i32
  }
  func.func @transform_2(%arg0: i32, %arg1: i32, %arg2: i32) -> (i32, i32, i32) {
    %c0_i32 = arith.constant 0 : i32
    %c0_i32_0 = arith.constant 0 : i32
    %c0_i32_1 = arith.constant 0 : i32
    return %arg0, %c0_i32, %c0_i32_0 : i32, i32, i32
  }
}

</mosaic_0001>

<bundles_post_ra>
// kernel: tpu_custom_call.1
= control target key start
LH: loop header
LB: loop body
LE: loop exit
PB: predicated region body
PF: predicated region fallthrough
CT: control target
= control target key end

     0   :  { %vm132_vm0 = vcmask 1044480   ;;  %v473_v5 = vmov 0   ;;  %s661_s0 = inlined_call_operand.vmem [shape: bf16[37,128], index: 0, kind: input, shape index: {}]   ;;  %s662_s1 = inlined_call_operand.vmem [shape: s32[37,1], index: 1, kind: input, shape index: {}]   ;;  %s663_s2 = inlined_call_operand.hbm [shape: f32[1,1,1], index: 2, kind: output, shape index: {}]  }
   0x1   :  { %v409_v0 = vld [vmem:[%s661_s0 + $0x8] sm:$0xff]   ;;  %v402_v1 = vld [vmem:[%s661_s0] sm:$0xff]   ;;  %v108_v2 = vld [vmem:[%s661_s0 + $0x10] sm:$0x7]  ;;  %414 = vset.pattern.permute.xlu1 %v473_v5  ;;  %415 = vset.pattern.permute.xlu2 %v473_v5 }
   0x2   :  { %v501_v3 = vunpack.c.l.bf16 %v409_v0  ;;  %v503_v4 = vunpack.c.l.bf16 %v402_v1 }
   0x3   :  { %7 = vsyncpa [#allocation6], 0  ;;  %v505_v6 = vunpack.c.l.bf16 %v108_v2  ;;  %416 = vset.pattern.permute.xlu0 %v473_v5  ;;  %v511_v8 = vunpack.c.h.bf16 %v409_v0  ;;  %v513_v9 = vunpack.c.h.bf16 %v402_v1  ;;  %v115_v10 = vld [vmem:[%s662_s1 + $0x8] sm:$0xff]  ;;  %v114_v11 = vld [vmem:[%s662_s1] sm:$0xff]  ;;  %vm87_vm1 = vcmask 7168   ;;  %s380_s27 = sshll.u32 %s663_s2, 4  ;;  %s381_s27 = int_to_ptr.hbm [resolvable:$true] %s380_s27 }
   0x4   :  { %128 = vmax.xlane.f32.xlu1 %v501_v3  ;;  %124 = vmax.xlane.f32.xlu0 %v503_v4  ;;  %v474_v12 = vmov -inf   ;;  %v475_v13 = vmov 0.0   ;;  %vm92_vm2 = vcmask 4096   ;;  %v116_v30 = vld [vmem:[%s662_s1 + $0x10] sm:$0xff]  ;;  %v117_v35 = vld [vmem:[%s662_s1 + $0x18] sm:$0xff]  ;;  %v120_v37 = vlaneseq }
   0x5   :  { %v133_v7 = vsel %vm132_vm0, %v505_v6, -inf  ;;  %90 = vst.msk [vmem:[#allocation2 + $0x10] sm:$0xff] %vm87_vm1, %v474_v12  ;;  %v118_v36 = vld [vmem:[%s662_s1 + $0x20] sm:$0x1f]  ;;  %vm82_vm8 = vcmask 0   ;;  %s476_s1 = smov [#allocation5]  }
   0x6   :  { %134 = vmax.xlane.f32.xlu2 %v133_v7  ;;  %88 = vst.msk [vmem:[#allocation2] sm:$0xff] %vm87_vm1, %v474_v12  ;;  %v121_v38 = vand.u32 127, %v120_v37  ;;  %s378_s24 = sshll.u32 %s476_s1, 4  ;;  %s379_s24 = int_to_ptr.vmem [resolvable:$true] %s378_s24 }
   0x7   :  { %89 = vst.msk [vmem:[#allocation2 + $0x8] sm:$0xff] %vm87_vm1, %v474_v12 }
   0x8   :  { %91 = vst.msk [vmem:[#allocation2 + $0x18] sm:$0xff] %vm87_vm1, %v474_v12 }
   0x9   :  { %100 = vst.msk [vmem:[#allocation4 + $0x8] sm:$0xff] %vm87_vm1, %v475_v13 }
   0xa   :  { %94 = vst.msk [vmem:[#allocation3] sm:$0xff] %vm87_vm1, %v475_v13 }
   0xb   :  { %95 = vst.msk [vmem:[#allocation3 + $0x8] sm:$0xff] %vm87_vm1, %v475_v13 }
   0xc   :  { %130 = vmax.xlane.f32.xlu1 %v511_v8  ;;  %126 = vmax.xlane.f32.xlu0 %v513_v9  ;;  %93 = vst.msk [vmem:[#allocation2 + $0x20] sm:$0x1f] %vm92_vm2, %v474_v12  ;;  %v548_v14 = vld [vmem:[#allocation2 + $0x10] sm:$0xff] }
   0xd   :  { %96 = vst.msk [vmem:[#allocation3 + $0x10] sm:$0xff] %vm87_vm1, %v475_v13  ;;  %v550_v15 = vld [vmem:[#allocation2] sm:$0xff] }
   0xe   :  { %97 = vst.msk [vmem:[#allocation3 + $0x18] sm:$0xff] %vm87_vm1, %v475_v13  ;;  %v579_v27 = vld [vmem:[#allocation2 + $0x8] sm:$0xff] }
   0xf   :  { %98 = vst.msk [vmem:[#allocation3 + $0x20] sm:$0x1f] %vm92_vm2, %v475_v13  ;;  %v577_v26 = vld [vmem:[#allocation2 + $0x18] sm:$0xff] }
  0x10   :  { %99 = vst.msk [vmem:[#allocation4] sm:$0xff] %vm87_vm1, %v475_v13  ;;  %v276_v37 = vld [vmem:[#allocation4 + $0x8] sm:$0xff] }
  0x11   :  { %101 = vst.msk [vmem:[#allocation4 + $0x10] sm:$0xff] %vm87_vm1, %v475_v13 }
  0x12   :  { %102 = vst.msk [vmem:[#allocation4 + $0x18] sm:$0xff] %vm87_vm1, %v475_v13 }
  0x13   :  { %103 = vst.msk [vmem:[#allocation4 + $0x20] sm:$0x1f] %vm92_vm2, %v475_v13  ;;  %v552_v18 = vld [vmem:[#allocation2 + $0x20] sm:$0x1f] }
  0x14   :  { %83 = vst.msk [vmem:[#allocation5] sm:$0x1] %vm82_vm8, %v475_v13 }
  0x1e   :  { %243 = vperm.xlu2 %415, %v115_v10  }
  0x25   :  { %240 = vperm.xlu1 %414, %v114_v11  }
  0x77   :  { %v129_v16 = vpop.xlane.xlu1 %128  ;;  %v125_v17 = vpop.xlane.xlu0 %124 }
  0x78   :  { %v555_v19 = vmax.f32 %v548_v14, %v129_v16  ;;  %v558_v20 = vmax.f32 %v550_v15, %v125_v17  ;;  %v275_v17 = vld [vmem:[#allocation4] sm:$0xff] }
  0x79   :  { %v135_v21 = vpop.xlane.xlu2 %134 }
  0x7a   :  { %v153_v22 = vsub.f32 %v548_v14, %v555_v19  ;;  %236 = vst.msk [vmem:[#allocation2 + $0x10] sm:$0xff] %vm87_vm1, %v555_v19  ;;  %v151_v23 = vsub.f32 %v550_v15, %v558_v20  ;;  %183 = vperm.xlu1 %414, %v555_v19   ;;  %173 = vperm.xlu2 %415, %v558_v20  }
  0x7b   :  { %v569_v24 = vmax.f32 %v552_v18, %v135_v21  ;;  %234 = vst.msk [vmem:[#allocation2] sm:$0xff] %vm87_vm1, %v558_v20  ;;  %v277_v20 = vld [vmem:[#allocation4 + $0x10] sm:$0xff] }
  0x7d   :  { %v155_v25 = vsub.f32 %v552_v18, %v569_v24  ;;  %238 = vst.msk [vmem:[#allocation2 + $0x20] sm:$0x1f] %vm92_vm2, %v569_v24 }
  0x7f   :  { %v131_v28 = vpop.xlane.xlu1 %130  ;;  %v127_v29 = vpop.xlane.xlu0 %126 }
  0x80   :  { %v585_v31 = vmax.f32 %v577_v26, %v131_v28  ;;  %v588_v32 = vmax.f32 %v579_v27, %v127_v29 }
  0x81   :  { %v244_v41 = vpop.permute.xlu2 %243 }
  0x82   :  { %v154_v33 = vsub.f32 %v577_v26, %v585_v31  ;;  %237 = vst.msk [vmem:[#allocation2 + $0x18] sm:$0xff] %vm87_vm1, %v585_v31  ;;  %v152_v34 = vsub.f32 %v579_v27, %v588_v32  ;;  %246 = vperm.xlu1 %414, %v116_v30   ;;  %178 = vperm.xlu0 %416, %v588_v32  }
  0x83   :  { %235 = vst.msk [vmem:[#allocation2 + $0x8] sm:$0xff] %vm87_vm1, %v588_v32  ;;  %188 = vperm.xlu2 %415, %v585_v31   ;;  %vm255_vm4 = vcmp.eq.s32.totalorder %v121_v38, %v244_v41  ;;  %v164_v41 = vmul.f32 1.442695, %v155_v25  ;;  %v146_v32 = vld [vmem:[#allocation3] sm:$0xff] }
  0x84   :  { %v260_v42 = vsel %vm255_vm4, %v513_v9, 0.0  ;;  %v162_v18 = vmul.f32 1.442695, %v154_v33 }
  0x8a   :  { %249 = vperm.xlu0 %416, %v117_v35  }
  0x8b   :  { %193 = vperm.xlu2 %415, %v569_v24  }
  0x93   :  { %252 = vperm.xlu2 %415, %v118_v36  }
  0x97   :  { %v241_v39 = vpop.permute.xlu1 %240 }
  0x98   :  { %vm254_vm3 = vcmp.eq.s32.totalorder %v121_v38, %v241_v39 }
  0x99   :  { %v259_v40 = vsel %vm254_vm3, %v503_v4, 0.0 }
  0xac   :  { %266 = vadd.xlane.f32.xlu1 %v260_v42  ;;  %v158_v42 = vmul.f32 1.442695, %v152_v34 }
  0xb4   :  { %264 = vadd.xlane.f32.xlu0 %v259_v40  ;;  %v156_v40 = vmul.f32 1.442695, %v151_v23 }
  0xbc   :  { %280 = vadd.xlane.f32.xlu2 %v503_v4  ;;  %282 = vadd.xlane.f32.xlu0 %v513_v9 }
  0xc4   :  { %284 = vadd.xlane.f32.xlu2 %v501_v3 }
  0xd4   :  { %v174_v43 = vpop.permute.xlu2 %173 }
  0xd5   :  { %v196_v50 = vsub.f32 %v503_v4, %v174_v43 }
  0xd7   :  { %v201_v52 = vmul.f32 1.442695, %v196_v50 }
  0xdd   :  { %v189_v44 = vpop.permute.xlu2 %188 }
  0xde   :  { %v199_v59 = vsub.f32 %v511_v8, %v189_v44  ;;  %v148_v44 = vld [vmem:[#allocation3 + $0x10] sm:$0xff] }
  0xe0   :  { %v207_v61 = vmul.f32 1.442695, %v199_v59 }
  0xe5   :  { %v194_v45 = vpop.permute.xlu2 %193 }
  0xe6   :  { %v200_v48 = vsub.f32 %v505_v6, %v194_v45 }
  0xe8   :  { %v209_v51 = vmul.f32 1.442695, %v200_v48  ;;  %v150_v48 = vld [vmem:[#allocation3 + $0x20] sm:$0x1f] }
  0xec   :  { %v184_v46 = vpop.permute.xlu1 %183 }
  0xed   :  { %v198_v47 = vsub.f32 %v501_v3, %v184_v46  ;;  %v253_v63 = vpop.permute.xlu2 %252 }
  0xee   :  { %vm258_vm6 = vcmp.eq.s32.totalorder %v121_v38, %v253_v63 }
  0xef   :  { %v205_v49 = vmul.f32 1.442695, %v198_v47  ;;  %v147_v47 = vld [vmem:[#allocation3 + $0x8] sm:$0xff] }
  0xf1   :  { %417 = vpow2.f32 %v205_v49 }
  0xf2   :  { %419 = vpow2.f32 %v209_v51 }
  0xf3   :  { %421 = vpow2.f32 %v201_v52 }
  0xf4   :  { %v247_v53 = vpop.permute.xlu1 %246  ;;  %v179_v54 = vpop.permute.xlu0 %178 }
  0xf5   :  { %vm256_vm5 = vcmp.eq.s32.totalorder %v121_v38, %v247_v53  ;;  %v197_v55 = vsub.f32 %v513_v9, %v179_v54  ;;  %v288_v9 = vsel %vm132_vm0, %v505_v6, 0.0 }
  0xf6   :  { %v261_v56 = vsel %vm256_vm5, %v501_v3, 0.0  ;;  %v263_v3 = vsel %vm258_vm6, %v505_v6, 0.0  ;;  %v160_v6 = vmul.f32 1.442695, %v153_v22 }
  0xf7   :  { %v418_v57 = vpop.eup %417  ;;  %v203_v58 = vmul.f32 1.442695, %v197_v55  ;;  %268 = vadd.xlane.f32.xlu1 %v261_v56  ;;  %v272_v7 = vsel %vm132_vm0, %v263_v3, 0.0  ;;  %v149_v55 = vld [vmem:[#allocation3 + $0x18] sm:$0xff] }
  0xf8   :  { %215 = vadd.xlane.f32.xlu2 %v418_v57  ;;  %v420_v60 = vpop.eup %419 }
  0xf9   :  { %423 = vpow2.f32 %v203_v58  ;;  %v422_v62 = vpop.eup %421  ;;  %v219_v1 = vsel %vm132_vm0, %v420_v60, 0.0 }
  0xfa   :  { %425 = vpow2.f32 %v207_v61 }
  0xfb   :  { %427 = vpow2.f32 %v160_v6 }
  0xfc   :  { %v250_v2 = vpop.permute.xlu0 %249  ;;  %429 = vpow2.f32 %v156_v40 }
  0xfd   :  { %vm257_vm7 = vcmp.eq.s32.totalorder %v121_v38, %v250_v2  ;;  %431 = vpow2.f32 %v164_v41  ;;  %v321_v41 = vld [vmem:[#allocation2 + $0x10] sm:$0xff] }
  0xfe   :  { %v262_v5 = vsel %vm257_vm7, %v511_v8, 0.0  ;;  %433 = vpow2.f32 %v158_v42 }
  0xff   :  { %v424_v0 = vpop.eup %423  ;;  %211 = vadd.xlane.f32.xlu1 %v422_v62  ;;  %435 = vpow2.f32 %v162_v18 }
 0x100   :  { %213 = vadd.xlane.f32.xlu0 %v424_v0  ;;  %220 = vadd.xlane.f32.xlu2 %v219_v1  ;;  %v426_v4 = vpop.eup %425 }
 0x101   :  { %v428_v43 = vpop.eup %427 }
 0x102   :  { %v168_v22 = vmul.f32 %v428_v43, %v148_v44  ;;  %v430_v24 = vpop.eup %429 }
 0x103   :  { %v432_v27 = vpop.eup %431  ;;  %v166_v13 = vmul.f32 %v430_v24, %v146_v32  ;;  %v322_v24 = vld [vmem:[#allocation2 + $0x18] sm:$0xff] }
 0x104   :  { %v434_v34 = vpop.eup %433  ;;  %v170_v26 = vmul.f32 %v432_v27, %v150_v48 }
 0x105   :  { %v167_v50 = vmul.f32 %v434_v34, %v147_v47  ;;  %v436_v54 = vpop.eup %435  ;;  %v323_v34 = vld [vmem:[#allocation2 + $0x20] sm:$0x1f] }
 0x106   :  { %v169_v56 = vmul.f32 %v436_v54, %v149_v55 }
 0x107   :  { %217 = vadd.xlane.f32.xlu1 %v426_v4 }
 0x108   :  { %270 = vadd.xlane.f32.xlu0 %v262_v5  ;;  %273 = vadd.xlane.f32.xlu2 %v272_v7 }
 0x10f   :  { %286 = vadd.xlane.f32.xlu1 %v511_v8 }
 0x110   :  { %289 = vadd.xlane.f32.xlu0 %v288_v9 }
 0x11f   :  { %v267_v29 = vpop.xlane.xlu1 %266 }
 0x120   :  { %v297_v35 = vmul.f32 0.9, %v267_v29  ;;  %v279_v29 = vld [vmem:[#allocation4 + $0x20] sm:$0x1f] }
 0x127   :  { %v265_v12 = vpop.xlane.xlu0 %264 }
 0x128   :  { %v296_v16 = vmul.f32 0.9, %v265_v12  ;;  %v278_v12 = vld [vmem:[#allocation4 + $0x18] sm:$0xff] }
 0x12f   :  { %v281_v10 = vpop.xlane.xlu2 %280  ;;  %v283_v30 = vpop.xlane.xlu0 %282 }
 0x130   :  { %v291_v11 = vmul.f32 0.00078125, %v281_v10  ;;  %v292_v36 = vmul.f32 0.00078125, %v283_v30  ;;  %v319_v10 = vld [vmem:[#allocation2] sm:$0xff] }
 0x132   :  { %v301_v21 = vadd.f32 %v296_v16, %v291_v11  ;;  %v302_v38 = vadd.f32 %v297_v35, %v292_v36 }
 0x134   :  { %v306_v28 = vadd.f32 %v301_v21, %v275_v17  ;;  %v307_v39 = vadd.f32 %v302_v38, %v276_v37  ;;  %v320_v37 = vld [vmem:[#allocation2 + $0x8] sm:$0xff] }
 0x136   :  { %311 = vst.msk [vmem:[#allocation4] sm:$0xff] %vm87_vm1, %v306_v28 }
 0x137   :  { %312 = vst.msk [vmem:[#allocation4 + $0x8] sm:$0xff] %vm87_vm1, %v307_v39  ;;  %v285_v8 = vpop.xlane.xlu2 %284 }
 0x138   :  { %v293_v14 = vmul.f32 0.00078125, %v285_v8 }
 0x13d   :  { %v344_v8 = vld [vmem:[#allocation4] sm:$0xff] }
 0x13e   :  { %v345_v42 = vld [vmem:[#allocation4 + $0x8] sm:$0xff] }
 0x16a   :  { %v269_v19 = vpop.xlane.xlu1 %268 }
 0x16b   :  { %v298_v45 = vmul.f32 0.9, %v269_v19  ;;  %v216_v15 = vpop.xlane.xlu2 %215 }
 0x16c   :  { %v224_v23 = vadd.f32 %v216_v15, %v168_v22 }
 0x16d   :  { %v303_v25 = vadd.f32 %v298_v45, %v293_v14 }
 0x16e   :  { %230 = vst.msk [vmem:[#allocation3 + $0x10] sm:$0xff] %vm87_vm1, %v224_v23 }
 0x16f   :  { %v308_v46 = vadd.f32 %v303_v25, %v277_v20 }
 0x171   :  { %313 = vst.msk [vmem:[#allocation4 + $0x10] sm:$0xff] %vm87_vm1, %v308_v46 }
 0x172   :  { %v212_v49 = vpop.xlane.xlu1 %211 }
 0x173   :  { %v222_v31 = vadd.f32 %v212_v49, %v166_v13  ;;  %v214_v33 = vpop.xlane.xlu0 %213  ;;  %v221_v51 = vpop.xlane.xlu2 %220 }
 0x174   :  { %v223_v52 = vadd.f32 %v214_v33, %v167_v50  ;;  %v226_v53 = vadd.f32 %v221_v51, %v170_v26 }
 0x175   :  { %228 = vst.msk [vmem:[#allocation3] sm:$0xff] %vm87_vm1, %v222_v31  ;;  %v326_v57 = vld [vmem:[#allocation3 + $0x10] sm:$0xff] }
 0x176   :  { %229 = vst.msk [vmem:[#allocation3 + $0x8] sm:$0xff] %vm87_vm1, %v223_v52  ;;  %437 = vlog2.f32 %v326_v57 }
 0x177   :  { %233 = vst.msk [vmem:[#allocation3 + $0x20] sm:$0x1f] %vm92_vm2, %v226_v53 }
 0x178   :  { %v346_v23 = vld [vmem:[#allocation4 + $0x10] sm:$0xff] }
 0x17a   :  { %v218_v58 = vpop.xlane.xlu1 %217 }
 0x17b   :  { %v225_v59 = vadd.f32 %v218_v58, %v169_v56  ;;  %v271_v60 = vpop.xlane.xlu0 %270  ;;  %v274_v63 = vpop.xlane.xlu2 %273  ;;  %v354_v58 = vld [vmem:[#allocation5] sm:$0x1] }
 0x17c   :  { %v324_v61 = vld [vmem:[#allocation3] sm:$0xff]  ;;  %v438_v1 = vpop.eup %437  ;;  %v299_v4 = vmul.f32 0.9, %v271_v60  ;;  %v300_v5 = vmul.f32 0.9, %v274_v63 }
 0x17d   :  { %231 = vst.msk [vmem:[#allocation3 + $0x18] sm:$0xff] %vm87_vm1, %v225_v59  ;;  %v325_v62 = vld [vmem:[#allocation3 + $0x8] sm:$0xff]  ;;  %439 = vlog2.f32 %v324_v61  ;;  %v334_v35 = vmul.f32 0.6931472, %v438_v1 }
 0x17e   :  { %441 = vlog2.f32 %v325_v62  ;;  %v328_v0 = vld [vmem:[#allocation3 + $0x20] sm:$0x1f] }
 0x17f   :  { %443 = vlog2.f32 %v328_v0  ;;  %v341_v14 = vadd.f32 %v334_v35, %v321_v41 }
 0x181   :  { %v351_v25 = vsub.f32 %v341_v14, %v346_v23 }
 0x182   :  { %v287_v2 = vpop.xlane.xlu1 %286 }
 0x183   :  { %v440_v3 = vpop.eup %439  ;;  %v294_v7 = vmul.f32 0.00078125, %v287_v2  ;;  %v290_v9 = vpop.xlane.xlu0 %289  ;;  %v358_v49 = vsel %vm87_vm1, %v351_v25, 0.0 }
 0x184   :  { %v442_v11 = vpop.eup %441  ;;  %v295_v16 = vmul.f32 0.00078125, %v290_v9  ;;  %v327_v17 = vld [vmem:[#allocation3 + $0x18] sm:$0xff]  ;;  %v330_v21 = vmul.f32 0.6931472, %v440_v3 }
 0x185   :  { %v304_v28 = vadd.f32 %v299_v4, %v294_v7  ;;  %v332_v30 = vmul.f32 0.6931472, %v442_v11  ;;  %445 = vlog2.f32 %v327_v17  ;;  %v444_v44 = vpop.eup %443 }
 0x186   :  { %v305_v36 = vadd.f32 %v300_v5, %v295_v16  ;;  %v339_v38 = vadd.f32 %v330_v21, %v319_v10  ;;  %v338_v20 = vmul.f32 0.6931472, %v444_v44 }
 0x187   :  { %v309_v39 = vadd.f32 %v304_v28, %v278_v12  ;;  %v340_v6 = vadd.f32 %v332_v30, %v320_v37 }
 0x188   :  { %v310_v40 = vadd.f32 %v305_v36, %v279_v29  ;;  %v349_v43 = vsub.f32 %v339_v38, %v344_v8  ;;  %v343_v46 = vadd.f32 %v338_v20, %v323_v34 }
 0x189   :  { %314 = vst.msk [vmem:[#allocation4 + $0x18] sm:$0xff] %vm87_vm1, %v309_v39  ;;  %v350_v19 = vsub.f32 %v340_v6, %v345_v42 }
 0x18a   :  { %315 = vst.msk [vmem:[#allocation4 + $0x20] sm:$0x1f] %vm92_vm2, %v310_v40  ;;  %v355_v45 = vsel %vm87_vm1, %v349_v43, 0.0 }
 0x18b   :  { %v446_v22 = vpop.eup %445  ;;  %v356_v15 = vsel %vm87_vm1, %v350_v19, 0.0 }
 0x18c   :  { %v336_v18 = vmul.f32 0.6931472, %v446_v22  ;;  %v357_v32 = vadd.f32 %v356_v15, %v355_v45 }
 0x18e   :  { %v342_v27 = vadd.f32 %v336_v18, %v322_v24  ;;  %v359_v26 = vadd.f32 %v358_v49, %v357_v32 }
 0x190   :  { %v347_v47 = vld [vmem:[#allocation4 + $0x18] sm:$0xff] }
 0x191   :  { %v348_v48 = vld [vmem:[#allocation4 + $0x20] sm:$0x1f]  ;;  %v352_v13 = vsub.f32 %v342_v27, %v347_v47 }
 0x192   :  { %v353_v50 = vsub.f32 %v343_v46, %v348_v48 }
 0x193   :  { %v360_v31 = vsel %vm87_vm1, %v352_v13, 0.0 }
 0x194   :  { %v361_v33 = vadd.f32 %v360_v31, %v359_v26  ;;  %v362_v51 = vsel %vm92_vm2, %v353_v50, 0.0 }
 0x196   :  { %v363_v52 = vadd.f32 %v362_v51, %v361_v33 }
 0x198   :  { %v364_v53 = vrot.slane %v363_v52, 4 }
 0x19a   :  { %v365_v54 = vadd.f32 %v364_v53, %v363_v52 }
 0x19c   :  { %v366_v55 = vrot.slane %v365_v54, 2 }
 0x19e   :  { %v367_v56 = vadd.f32 %v366_v55, %v365_v54 }
 0x1a0   :  { %v368_v57 = vrot.slane %v367_v56, 1 }
 0x1a2   :  { %v369_v59 = vadd.f32 %v368_v57, %v367_v56 }
 0x1a4   :  { %v370_v60 = vadd.f32 %v369_v59, %v354_v58 }
 0x1a6   :  { %372 = vst.msk [vmem:[#allocation5] sm:$0x1] %vm82_vm8, %v370_v60 }
 0x1a7   :  { %383 = dma.vmem_to_hbm [thread:$0]  %s379_s24, 16, %s381_s27, [#allocation6]  }
 0x1a8   :  { %471 = dma.done.wait [#allocation6], 16  }
 0x1a9   :  { %472 = vsyncadd [#allocation6], 4294967280 }
 0x1aa   :  { %388 = vsyncpa [#allocation6], 1 }

</bundles_post_ra>
